<compile_context>
chip_gen: v7x
topology: tpu7x:2x2x1
jax: 0.10.0
libtpu: 0.0.40
codegen_flags: <defaults>
</compile_context>

<pallas_src>
import functools

import jax
import jax.numpy as jnp
from jax.experimental import pallas as pl
from jax.experimental.pallas import tpu as pltpu

BN_EPS = 1e-5
_VMEM_LIMIT = 32 * 1024 * 1024  # explicit scoped-VMEM budget, safe on v5e/v6e/v7x


def _hidden_kernel(x_ref, w1_ref, gamma_ref, beta_ref, h_ref, acc_ref):
    """h_post[:, h_tile] = relu(batchnorm(x @ W1[:, h_tile]))  (reduce over in_dim)."""
    k = pl.program_id(1)

    @pl.when(k == 0)
    def _():
        acc_ref[...] = jnp.zeros_like(acc_ref)

    # bf16 x bf16 on the MXU, f32 accumulation.
    acc_ref[...] += jnp.dot(x_ref[...], w1_ref[...],
                            preferred_element_type=jnp.float32)

    @pl.when(k == pl.num_programs(1) - 1)
    def _():
        acc = acc_ref[...]                                     # [B, th] f32
        # Training-mode BatchNorm1d over the whole batch, one-pass variance,
        # folded into a single per-feature scale/shift.
        mean = jnp.mean(acc, axis=0, keepdims=True)            # [1, th]
        var = jnp.mean(acc * acc, axis=0, keepdims=True) - mean * mean
        scale = gamma_ref[...] * jax.lax.rsqrt(var + BN_EPS)
        shift = beta_ref[...] - mean * scale
        # NOTE: Linear-1 bias b1 cancels exactly under batch-stat BatchNorm
        # (it shifts mean by the same constant), so it is intentionally omitted.
        h_ref[...] = jnp.maximum(acc * scale + shift, 0.0).astype(h_ref.dtype)


def _output_kernel(h_ref, w2_ref, b2_ref, o_ref):
    """out[:, n_tile] = h_post @ W2[:, n_tile] + b2[n_tile]."""
    o_ref[...] = (jnp.dot(h_ref[...], w2_ref[...],
                          preferred_element_type=jnp.float32)
                  + b2_ref[...]).astype(o_ref.dtype)


def predictor_forward(x, params, *, tile_k=512, tile_h=256, tile_n=512):
    B, in_dim = x.shape
    hidden = params["w1"].shape[1]
    out_dim = params["w2"].shape[1]

    # Clamp tiles to full dims for small problems; require even tiling otherwise.
    tk = min(tile_k, in_dim)
    th = min(tile_h, hidden)
    tn = min(tile_n, out_dim)
    assert in_dim % tk == 0 and hidden % th == 0 and out_dim % tn == 0
    nk, nh, nn = in_dim // tk, hidden // th, out_dim // tn

    # bf16 matmul operands (f32 accumulate in-kernel); small vectors stay f32.
    xb = x.astype(jnp.bfloat16)
    w1 = params["w1"].astype(jnp.bfloat16)
    w2 = params["w2"].astype(jnp.bfloat16)
    gamma = params["gamma"].astype(jnp.float32)
    beta = params["beta"].astype(jnp.float32)
    b2 = params["b2"].astype(jnp.float32)

    # ---------------- Kernel A: Linear1 + fused BatchNorm + ReLU -> bf16 ----------
    cost_a = pl.CostEstimate(
        flops=2 * B * in_dim * hidden,
        transcendentals=hidden,  # rsqrt per feature
        bytes_accessed=(B * in_dim * 2) * nh + in_dim * hidden * 2
                       + B * hidden * 2 + 2 * hidden * 4,
    )
    h_post = pl.pallas_call(
        _hidden_kernel,
        out_shape=jax.ShapeDtypeStruct((B, hidden), jnp.bfloat16),
        grid=(nh, nk),
        in_specs=[
            pl.BlockSpec((B, tk), lambda h, k: (0, k)),    # x (batch never tiled)
            pl.BlockSpec((tk, th), lambda h, k: (k, h)),   # W1
            pl.BlockSpec((1, th), lambda h, k: (0, h)),    # gamma
            pl.BlockSpec((1, th), lambda h, k: (0, h)),    # beta
        ],
        out_specs=pl.BlockSpec((B, th), lambda h, k: (0, h)),
        scratch_shapes=[pltpu.VMEM((B, th), jnp.float32)],
        compiler_params=pltpu.CompilerParams(
            dimension_semantics=("parallel", "arbitrary"),
            vmem_limit_bytes=_VMEM_LIMIT),
        cost_estimate=cost_a,
    )(xb, w1, gamma, beta)

    # ---------------- Kernel B: Linear2, parallel over out_dim tiles --------------
    cost_b = pl.CostEstimate(
        flops=2 * B * hidden * out_dim,
        transcendentals=0,
        bytes_accessed=B * hidden * 2 + hidden * out_dim * 2
                       + out_dim * 4 + B * out_dim * 4,
    )
    out = pl.pallas_call(
        _output_kernel,
        out_shape=jax.ShapeDtypeStruct((B, out_dim), jnp.float32),
        grid=(nn,),
        in_specs=[
            pl.BlockSpec((B, hidden), lambda n: (0, 0)),   # h_post stays VMEM-resident
            pl.BlockSpec((hidden, tn), lambda n: (0, n)),  # W2
            pl.BlockSpec((1, tn), lambda n: (0, n)),       # b2
        ],
        out_specs=pl.BlockSpec((B, tn), lambda n: (0, n)),
        compiler_params=pltpu.CompilerParams(
            dimension_semantics=("parallel",),
            vmem_limit_bytes=_VMEM_LIMIT),
        cost_estimate=cost_b,
    )(h_post, w2, b2)
    return out


def init_params(key, in_dim, hidden_dim, out_dim):
    k1, k2, k3, k4, k5, k6 = jax.random.split(key, 6)
    bound1 = 1.0 / (in_dim ** 0.5)
    bound2 = 1.0 / (hidden_dim ** 0.5)
    return {
        # Stored transposed relative to PyTorch ([in, out]) so kernels do x @ W.
        "w1": jax.random.uniform(k1, (in_dim, hidden_dim), jnp.float32, -bound1, bound1),
        "b1": jax.random.uniform(k2, (1, hidden_dim), jnp.float32, -bound1, bound1),
        # Perturb BN affine away from (1, 0) so the test exercises it.
        "gamma": 1.0 + 0.1 * jax.random.uniform(k5, (1, hidden_dim), jnp.float32, -1.0, 1.0),
        "beta": 0.1 * jax.random.normal(k6, (1, hidden_dim), jnp.float32),
        "w2": jax.random.uniform(k3, (hidden_dim, out_dim), jnp.float32, -bound2, bound2),
        "b2": jax.random.uniform(k4, (1, out_dim), jnp.float32, -bound2, bound2),
    }


def reference_forward(x, p):
    # Same bf16 rounding of matmul operands as the kernel path; math in f32.
    xb = x.astype(jnp.bfloat16).astype(jnp.float32)
    w1 = p["w1"].astype(jnp.bfloat16).astype(jnp.float32)
    w2 = p["w2"].astype(jnp.bfloat16).astype(jnp.float32)
    h = xb @ w1 + p["b1"]
    mean = jnp.mean(h, axis=0, keepdims=True)
    var = jnp.mean((h - mean) ** 2, axis=0, keepdims=True)
    h = (h - mean) / jnp.sqrt(var + BN_EPS)
    h = h * p["gamma"] + p["beta"]
    h = jnp.maximum(h, 0.0)
    h = h.astype(jnp.bfloat16).astype(jnp.float32)
    return h @ w2 + p["b2"]


if __name__ == "__main__":
    key = jax.random.PRNGKey(0)
    kx1, kx2, kp1, kp2 = jax.random.split(key, 4)

    # Case 1: small but multi-tile (exercises K-reduction + parallel tile axes).
    B1, in1, hid1, out1 = 16, 256, 256, 256
    x1 = jax.random.normal(kx1, (B1, in1), jnp.float32)
    p1 = init_params(kp1, in1, hid1, out1)
    fwd1 = jax.jit(functools.partial(predictor_forward,
                                     tile_k=128, tile_h=128, tile_n=128))
    o1 = jax.block_until_ready(fwd1(x1, p1))
    r1 = reference_forward(x1, p1)
    assert o1.shape == (B1, out1)
    assert jnp.allclose(o1, r1, atol=2e-2, rtol=2e-2), float(jnp.max(jnp.abs(o1 - r1)))

    # Case 2: tiny shapes (tiles clamp to full dims, single-step grid).
    B2, in2, hid2, out2 = 8, 32, 16, 32
    x2 = jax.random.normal(kx2, (B2, in2), jnp.float32)
    p2 = init_params(kp2, in2, hid2, out2)
    o2 = jax.block_until_ready(jax.jit(predictor_forward)(x2, p2))
    r2 = reference_forward(x2, p2)
    assert o2.shape == (B2, out2)
    assert jnp.allclose(o2, r2, atol=2e-2, rtol=2e-2), float(jnp.max(jnp.abs(o2 - r2)))

    print("KERNEL_OK")
</pallas_src>

<mosaic_0001>
module attributes {stable_mosaic.version = 11 : i64} {
  func.func @_hidden_kernel(%arg0: i32, %arg1: i32, %arg2: memref<16x128xbf16, #tpu.memory_space<vmem>>, %arg3: memref<128x128xbf16, #tpu.memory_space<vmem>>, %arg4: memref<1x128xf32, #tpu.memory_space<vmem>>, %arg5: memref<1x128xf32, #tpu.memory_space<vmem>>, %arg6: memref<16x128xbf16, #tpu.memory_space<vmem>>, %arg7: memref<16x128xf32, #tpu.memory_space<vmem>>) attributes {dimension_semantics = [#tpu.dimension_semantics<parallel>, #tpu.dimension_semantics<arbitrary>], iteration_bounds = array<i64: 2, 2>, scalar_prefetch = 0 : i64, scratch_operands = 1 : i64, tpu.core_type = #tpu.core_type<tc>, window_params = [{transform_indices = @transform_0, window_bounds = array<i64: 16, 128>}, {transform_indices = @transform_1, window_bounds = array<i64: 128, 128>}, {transform_indices = @transform_2, window_bounds = array<i64: 1, 128>}, {transform_indices = @transform_3, window_bounds = array<i64: 1, 128>}, {transform_indices = @transform_4, window_bounds = array<i64: 16, 128>}]} {
    %c0_i32 = arith.constant 0 : i32
    %0 = arith.cmpi eq, %arg1, %c0_i32 : i32
    %1 = arith.extui %0 : i1 to i32
    %c0_i32_0 = arith.constant 0 : i32
    %2 = arith.cmpi ne, %1, %c0_i32_0 : i32
    scf.if %2 {
      %cst_9 = arith.constant 0.000000e+00 : f32
      %12 = vector.broadcast %cst_9 : f32 to vector<16x128xf32>
      %c0_10 = arith.constant 0 : index
      %c0_11 = arith.constant 0 : index
      %13 = vector.load %arg7[%c0_10, %c0_11] : memref<16x128xf32, #tpu.memory_space<vmem>>, vector<16x128xf32>
      tpu.vector_store %arg7[%c0_10, %c0_11], %12 {strides = array<i32>} : memref<16x128xf32, #tpu.memory_space<vmem>>, vector<16x128xf32>,
    } else {
    }
    %c0 = arith.constant 0 : index
    %c0_1 = arith.constant 0 : index
    %3 = vector.load %arg7[%c0, %c0_1] : memref<16x128xf32, #tpu.memory_space<vmem>>, vector<16x128xf32>
    %c0_2 = arith.constant 0 : index
    %c0_3 = arith.constant 0 : index
    %4 = vector.load %arg2[%c0_2, %c0_3] : memref<16x128xbf16, #tpu.memory_space<vmem>>, vector<16x128xbf16>
    %c0_4 = arith.constant 0 : index
    %c0_5 = arith.constant 0 : index
    %5 = vector.load %arg3[%c0_4, %c0_5] : memref<128x128xbf16, #tpu.memory_space<vmem>>, vector<128x128xbf16>
    %cst = arith.constant dense<0.000000e+00> : vector<16x128xf32>
    %6 = tpu.matmul %4, %5, %cst {dimension_numbers = #tpu.dot_dimension_numbers<[1], [0], [0], [1], [0, 0, 1, 1], [], []>} : vector<16x128xbf16>, vector<128x128xbf16>, vector<16x128xf32> -> vector<16x128xf32>
    %7 = arith.addf %3, %6 : vector<16x128xf32>
    %c0_6 = arith.constant 0 : index
    %c0_7 = arith.constant 0 : index
    %8 = vector.load %arg7[%c0_6, %c0_7] : memref<16x128xf32, #tpu.memory_space<vmem>>, vector<16x128xf32>
    tpu.vector_store %arg7[%c0_6, %c0_7], %7 {strides = array<i32>} : memref<16x128xf32, #tpu.memory_space<vmem>>, vector<16x128xf32>,
    %c1_i32 = arith.constant 1 : i32
    %9 = arith.cmpi eq, %arg1, %c1_i32 : i32
    %10 = arith.extui %9 : i1 to i32
    %c0_i32_8 = arith.constant 0 : i32
    %11 = arith.cmpi ne, %10, %c0_i32_8 : i32
    scf.if %11 {
      %c0_9 = arith.constant 0 : index
      %c0_10 = arith.constant 0 : index
      %12 = vector.load %arg7[%c0_9, %c0_10] : memref<16x128xf32, #tpu.memory_space<vmem>>, vector<16x128xf32>
      %cst_11 = arith.constant dense<0.000000e+00> : vector<128xf32>
      %13 = vector.multi_reduction <add>, %12, %cst_11 [0] : vector<16x128xf32> to vector<128xf32>
      %14 = vector.shape_cast %13 : vector<128xf32> to vector<1x128xf32>
      %cst_12 = arith.constant 1.600000e+01 : f32
      %15 = vector.broadcast %cst_12 : f32 to vector<1x128xf32>
      %16 = arith.divf %14, %15 : vector<1x128xf32>
      %17 = arith.mulf %12, %12 : vector<16x128xf32>
      %cst_13 = arith.constant dense<0.000000e+00> : vector<128xf32>
      %18 = vector.multi_reduction <add>, %17, %cst_13 [0] : vector<16x128xf32> to vector<128xf32>
      %19 = vector.shape_cast %18 : vector<128xf32> to vector<1x128xf32>
      %cst_14 = arith.constant 1.600000e+01 : f32
      %20 = vector.broadcast %cst_14 : f32 to vector<1x128xf32>
      %21 = arith.divf %19, %20 : vector<1x128xf32>
      %22 = arith.mulf %16, %16 : vector<1x128xf32>
      %23 = arith.subf %21, %22 : vector<1x128xf32>
      %c0_15 = arith.constant 0 : index
      %c0_16 = arith.constant 0 : index
      %24 = vector.load %arg4[%c0_15, %c0_16] : memref<1x128xf32, #tpu.memory_space<vmem>>, vector<1x128xf32>
      %cst_17 = arith.constant 9.99999974E-6 : f32
      %25 = vector.broadcast %cst_17 : f32 to vector<1x128xf32>
      %26 = arith.addf %23, %25 : vector<1x128xf32>
      %27 = math.rsqrt %26 : vector<1x128xf32>
      %28 = arith.mulf %24, %27 : vector<1x128xf32>
      %c0_18 = arith.constant 0 : index
      %c0_19 = arith.constant 0 : index
      %29 = vector.load %arg5[%c0_18, %c0_19] : memref<1x128xf32, #tpu.memory_space<vmem>>, vector<1x128xf32>
      %30 = arith.mulf %16, %28 : vector<1x128xf32>
      %31 = arith.subf %29, %30 : vector<1x128xf32>
      %32 = vector.broadcast %28 : vector<1x128xf32> to vector<16x128xf32>
      %33 = arith.mulf %12, %32 : vector<16x128xf32>
      %34 = vector.broadcast %31 : vector<1x128xf32> to vector<16x128xf32>
      %35 = arith.addf %33, %34 : vector<16x128xf32>
      %cst_20 = arith.constant 0.000000e+00 : f32
      %36 = vector.broadcast %cst_20 : f32 to vector<16x128xf32>
      %37 = arith.maximumf %35, %36 : vector<16x128xf32>
      %38 = arith.truncf %37 : vector<16x128xf32> to vector<16x128xbf16>
      %c0_21 = arith.constant 0 : index
      %c0_22 = arith.constant 0 : index
      %39 = vector.load %arg6[%c0_21, %c0_22] : memref<16x128xbf16, #tpu.memory_space<vmem>>, vector<16x128xbf16>
      tpu.vector_store %arg6[%c0_21, %c0_22], %38 {strides = array<i32>} : memref<16x128xbf16, #tpu.memory_space<vmem>>, vector<16x128xbf16>,
    } else {
    }
    return
  }
  func.func @transform_0(%arg0: i32, %arg1: i32) -> (i32, i32) {
    %c0_i32 = arith.constant 0 : i32
    %c0_i32_0 = arith.constant 0 : i32
    return %c0_i32, %arg1 : i32, i32
  }
  func.func @transform_1(%arg0: i32, %arg1: i32) -> (i32, i32) {
    %c0_i32 = arith.constant 0 : i32
    return %arg1, %arg0 : i32, i32
  }
  func.func @transform_2(%arg0: i32, %arg1: i32) -> (i32, i32) {
    %c0_i32 = arith.constant 0 : i32
    %c0_i32_0 = arith.constant 0 : i32
    return %c0_i32, %arg0 : i32, i32
  }
  func.func @transform_3(%arg0: i32, %arg1: i32) -> (i32, i32) {
    %c0_i32 = arith.constant 0 : i32
    %c0_i32_0 = arith.constant 0 : i32
    return %c0_i32, %arg0 : i32, i32
  }
  func.func @transform_4(%arg0: i32, %arg1: i32) -> (i32, i32) {
    %c0_i32 = arith.constant 0 : i32
    %c0_i32_0 = arith.constant 0 : i32
    return %c0_i32, %arg0 : i32, i32
  }
}

module attributes {stable_mosaic.version = 11 : i64} {
  func.func @_output_kernel(%arg0: i32, %arg1: memref<16x256xbf16, #tpu.memory_space<vmem>>, %arg2: memref<256x128xbf16, #tpu.memory_space<vmem>>, %arg3: memref<1x128xf32, #tpu.memory_space<vmem>>, %arg4: memref<16x128xf32, #tpu.memory_space<vmem>>) attributes {dimension_semantics = [#tpu.dimension_semantics<parallel>], iteration_bounds = array<i64: 2>, scalar_prefetch = 0 : i64, scratch_operands = 0 : i64, tpu.core_type = #tpu.core_type<tc>, window_params = [{pipeline_mode = #tpu.pipeline_mode<synchronous>, transform_indices = @transform_0, window_bounds = array<i64: 16, 256>}, {transform_indices = @transform_1, window_bounds = array<i64: 256, 128>}, {transform_indices = @transform_2, window_bounds = array<i64: 1, 128>}, {transform_indices = @transform_3, window_bounds = array<i64: 16, 128>}]} {
    %c0 = arith.constant 0 : index
    %c0_0 = arith.constant 0 : index
    %0 = vector.load %arg1[%c0, %c0_0] : memref<16x256xbf16, #tpu.memory_space<vmem>>, vector<16x256xbf16>
    %c0_1 = arith.constant 0 : index
    %c0_2 = arith.constant 0 : index
    %1 = vector.load %arg2[%c0_1, %c0_2] : memref<256x128xbf16, #tpu.memory_space<vmem>>, vector<256x128xbf16>
    %cst = arith.constant dense<0.000000e+00> : vector<16x128xf32>
    %2 = tpu.matmul %0, %1, %cst {dimension_numbers = #tpu.dot_dimension_numbers<[1], [0], [0], [1], [0, 0, 1, 1], [], []>} : vector<16x256xbf16>, vector<256x128xbf16>, vector<16x128xf32> -> vector<16x128xf32>
    %c0_3 = arith.constant 0 : index
    %c0_4 = arith.constant 0 : index
    %3 = vector.load %arg3[%c0_3, %c0_4] : memref<1x128xf32, #tpu.memory_space<vmem>>, vector<1x128xf32>
    %4 = vector.broadcast %3 : vector<1x128xf32> to vector<16x128xf32>
    %5 = arith.addf %2, %4 : vector<16x128xf32>
    %c0_5 = arith.constant 0 : index
    %c0_6 = arith.constant 0 : index
    %6 = vector.load %arg4[%c0_5, %c0_6] : memref<16x128xf32, #tpu.memory_space<vmem>>, vector<16x128xf32>
    tpu.vector_store %arg4[%c0_5, %c0_6], %5 {strides = array<i32>} : memref<16x128xf32, #tpu.memory_space<vmem>>, vector<16x128xf32>,
    return
  }
  func.func @transform_0(%arg0: i32) -> (i32, i32) {
    %c0_i32 = arith.constant 0 : i32
    %c0_i32_0 = arith.constant 0 : i32
    %c0_i32_1 = arith.constant 0 : i32
    return %c0_i32, %c0_i32_0 : i32, i32
  }
  func.func @transform_1(%arg0: i32) -> (i32, i32) {
    %c0_i32 = arith.constant 0 : i32
    %c0_i32_0 = arith.constant 0 : i32
    return %c0_i32, %arg0 : i32, i32
  }
  func.func @transform_2(%arg0: i32) -> (i32, i32) {
    %c0_i32 = arith.constant 0 : i32
    %c0_i32_0 = arith.constant 0 : i32
    return %c0_i32, %arg0 : i32, i32
  }
  func.func @transform_3(%arg0: i32) -> (i32, i32) {
    %c0_i32 = arith.constant 0 : i32
    %c0_i32_0 = arith.constant 0 : i32
    return %c0_i32, %arg0 : i32, i32
  }
}

</mosaic_0001>

<bundles_post_ra>
// kernel: predictor_forward.2
= control target key start
LH: loop header
LB: loop body
LE: loop exit
PB: predicated region body
PF: predicated region fallthrough
CT: control target
= control target key end

     0   :  { %s1036_s15 = smov 0   ;;  %s1038_s16 = smov 0   ;;  %s1256_s0 = inlined_call_operand.vmem [shape: bf16[16,256], index: 0, kind: input, shape index: {}]   ;;  %s1257_s1 = inlined_call_operand.vmem [shape: bf16[256,256], index: 1, kind: input, shape index: {}]   ;;  %s1258_s2 = inlined_call_operand.vmem [shape: f32[1,256], index: 2, kind: input, shape index: {}]   ;;  %s1259_s3 = inlined_call_operand.vmem [shape: f32[1,256], index: 3, kind: input, shape index: {}]   ;;  %s1260_s4 = inlined_call_operand.vmem [shape: bf16[16,256], index: 4, kind: output, shape index: {}]  }
   0x1   :  { %s1040_s17 = smov 0   ;;  %s1042_s18 = smov 0  }
   0x2   :  { %s1044_s19 = smov 0   ;;  %s1046_s20 = smov 0  }
   0x3   :  { %s1048_s21 = smov 0   ;;  %s1050_s22 = smov 0  }
   0x4   :  { %s1052_s23 = smov 0   ;;  %s1054_s24 = smov 0  }
   0x5   :  { %s1056_s25 = smov 0  }
   0x6 LB: > { %1264 = sst [smem:[#allocation6_spill]] %s986_s20  ;;  %s750_s26 = sadd.s32 4294967295, %s1006_s25   ;;  %s1006_s25 = sphi %s1056_s25, %s14_s25   ;;  %s1002_s24 = sphi %s1054_s24, %s1282_s24   ;;  %s998_s23 = sphi %s1052_s23, %s1281_s23   ;;  %s994_s22 = sphi %s1050_s22, %s1280_s22   ;;  %s990_s21 = sphi %s1048_s21, %s1279_s21   ;;  %s986_s20 = sphi %s1046_s20, %s1272_s20   ;;  %s982_s19 = sphi %s1044_s19, %s1271_s19   ;;  %s978_s18 = sphi %s1042_s18, %s1278_s18   ;;  %s974_s17 = sphi %s1040_s17, %s1277_s17   ;;  %s970_s16 = sphi %s1038_s16, %s1276_s16   ;;  %s966_s15 = sphi %s1036_s15, %s1275_s15  }
   0x7   : > { %s23_s27 = sadd.s32 1, %s998_s23  ;;  %s26_s28 = sadd.s32 1, %s1002_s24 }
   0x8   : > { %p24_p0 = scmp.ge.s32.totalorder %s23_s27, 2  ;;  %s33_s29 = sadd.s32 1, %s986_s20 }
   0x9   : > { %p40_p1 = scmp.ne.s32.totalorder %s986_s20, %s982_s19  ;;  %p41_p2 = scmp.eq.s32.totalorder %s1006_s25, 0 }
   0xa   : > { %s1284_s27 = smov (%p24_p0, %s23_s27), 0  ;;  %s1286_s28 = smov (!%p24_p0, %s26_s28), %s1002_s24 }
   0xb   : > { %1265 = sst [smem:[#allocation7_spill]] %s1284_s27  ;;  %s30_s30 = ssub.s32 %s998_s23, %s1284_s27 }
   0xc   : > { %p28_p3 = scmp.ge.s32.totalorder %s1286_s28, 2  ;;  %p31_p4 = scmp.eq.s32.totalorder %s30_s30, 0 }
   0xd   : > { %p1103_p5 = por %p41_p2, %p40_p1  ;;  %s61_s6 = sadd.s32 1, %s978_s18 }
   0xe   : > { %s1288_s28 = smov (%p28_p3, %s1286_s28), 0  ;;  %p68_p6 = scmp.ne.s32.totalorder %s978_s18, %s974_s17 }
   0xf   : > { %1267 = sst [smem:[#allocation8_spill]] %s1288_s28  ;;  %s57_s8 = ssub.s32 %s1002_s24, %s1288_s28 }
  0x10   : > { %s1111_s7 = scalar_select %p31_p4, %s986_s20, %s33_s29  }
  0x11   : > { %s58_s9 = sor.u32 %s57_s8, %s30_s30  ;;  %p137_p7 = scmp.eq.s32.totalorder %s57_s8, 0 }
  0x12   : > { %1268 = sst [smem:[#allocation9_spill]] %s1111_s7  ;;  %p59_p8 = scmp.eq.s32.totalorder %s58_s9, 0 }
  0x13   : > { %p1117_p9 = por %p68_p6, %p41_p2  ;;  %s139_s11 = sadd.s32 1, %s970_s16 }
  0x14   : > { %p149_p10 = scmp.ne.s32.totalorder %s970_s16, %s966_s15  ;;  %p150_p11 = scmp.eq.s32.totalorder %s750_s26, 3 }
  0x15   : > { %s1125_s12 = scalar_select %p59_p8, %s978_s18, %s61_s6  }
  0x16   : > { %s1128_s13 = scalar_select %p137_p7, %s970_s16, %s139_s11  }
  0x17   : > { %p1130_p12 = por %p150_p11, %p149_p10  ;;  %p753_p13 = scmp.ge.s32.totalorder %s1006_s25, 4 }
  0x19   : > { %172 = sbr.rel (%p753_p13) target bundleno = 55 (0x37), region = 16 }
  0x20   : > { %175 = sbr.rel (!%p1103_p5) target bundleno = 39 (0x27), region = 20  ;;  %s177_s29 = sand.u32 (%p1103_p5), 1, %s986_s20  }
  0x21   : > { %s755_s30 = sshll.u32 (%p1103_p5), %s998_s23, 2  ;;  %s754_s8 = sshll.u32 (%p1103_p5), %s177_s29, 3 }
  0x22   : > { %s181_s11 = scalar_lea.vmem (%p1103_p5), %s1256_s0, %s755_s30  ;;  %s179_s26 = scalar_lea.vmem (%p1103_p5), [#allocation3], %s754_s8 }
  0x23   : > { %v197_v0 = vld [vmem:[%s181_s11] sm:$0xf] (%p1103_p5)  ;;  %v199_v1 = vld [vmem:[%s181_s11 + $0x8] sm:$0xf] (%p1103_p5) }
  0x24   : > { %198 = vst [vmem:[%s179_s26] sm:$0xf] (%p1103_p5), %v197_v0  ;;  %200 = vst [vmem:[%s179_s26 + $0x4] sm:$0xf] (%p1103_p5), %v199_v1 }
  0x27 PF: > { %227 = sbr.rel (!%p1117_p9) target bundleno = 55 (0x37), region = 61  ;;  %s229_s5 = sand.u32 (%p1117_p9), 1, %s978_s18  }
  0x28   : > { %s781_s28 = sshll.u32 (%p1117_p9), %s998_s23, 5  ;;  %s756_s27 = sshll.u32 (%p1117_p9), %s229_s5, 6 }
  0x29   : > { %s234_s29 = sadd.s32 (%p1117_p9), %s1002_s24, %s781_s28  ;;  %s231_s10 = scalar_lea.vmem (%p1117_p9), [#allocation4], %s756_s27 }
  0x2a   : > { %s759_s7 = sshll.u32 (%p1117_p9), %s234_s29, 2 }
  0x2b   : > { %s1150_s30 = scalar_lea.vmem (%p1117_p9), %s1257_s1, %s759_s7 }
  0x2c   : > { %v252_v2 = vld [vmem:[%s1150_s30] sm:$0xf] (%p1117_p9)  ;;  %v254_v3 = vld [vmem:[%s1150_s30 + $0x8] sm:$0xf] (%p1117_p9)  ;;  %v256_v4 = vld [vmem:[%s1150_s30 + $0x10] sm:$0xf] (%p1117_p9) }
  0x2d   : > { %253 = vst [vmem:[%s231_s10] sm:$0xf] (%p1117_p9), %v252_v2  ;;  %255 = vst [vmem:[%s231_s10 + $0x4] sm:$0xf] (%p1117_p9), %v254_v3  ;;  %v258_v5 = vld [vmem:[%s1150_s30 + $0x18] sm:$0xf] (%p1117_p9) }
  0x2e   : > { %257 = vst [vmem:[%s231_s10 + $0x8] sm:$0xf] %v256_v4  ;;  %v260_v6 = vld [vmem:[%s1150_s30 + $0x20] sm:$0xf]  ;;  %v262_v7 = vld [vmem:[%s1150_s30 + $0x28] sm:$0xf] }
  0x2f   : > { %259 = vst [vmem:[%s231_s10 + $0xc] sm:$0xf] %v258_v5  ;;  %261 = vst [vmem:[%s231_s10 + $0x10] sm:$0xf] %v260_v6  ;;  %v264_v8 = vld [vmem:[%s1150_s30 + $0x30] sm:$0xf] }
  0x30   : > { %263 = vst [vmem:[%s231_s10 + $0x14] sm:$0xf] %v262_v7  ;;  %v266_v9 = vld [vmem:[%s1150_s30 + $0x38] sm:$0xf]  ;;  %v268_v10 = vld [vmem:[%s1150_s30 + $0x40] sm:$0xf] }
  0x31   : > { %265 = vst [vmem:[%s231_s10 + $0x18] sm:$0xf] %v264_v8  ;;  %267 = vst [vmem:[%s231_s10 + $0x1c] sm:$0xf] %v266_v9  ;;  %v270_v11 = vld [vmem:[%s1150_s30 + $0x48] sm:$0xf] }
  0x32   : > { %269 = vst [vmem:[%s231_s10 + $0x20] sm:$0xf] %v268_v10  ;;  %v272_v12 = vld [vmem:[%s1150_s30 + $0x50] sm:$0xf]  ;;  %v274_v13 = vld [vmem:[%s1150_s30 + $0x58] sm:$0xf] }
  0x33   : > { %271 = vst [vmem:[%s231_s10 + $0x24] sm:$0xf] %v270_v11  ;;  %273 = vst [vmem:[%s231_s10 + $0x28] sm:$0xf] %v272_v12  ;;  %v276_v14 = vld [vmem:[%s1150_s30 + $0x60] sm:$0xf] }
  0x34   : > { %275 = vst [vmem:[%s231_s10 + $0x2c] sm:$0xf] %v274_v13  ;;  %v278_v15 = vld [vmem:[%s1150_s30 + $0x68] sm:$0xf]  ;;  %v280_v16 = vld [vmem:[%s1150_s30 + $0x70] sm:$0xf] }
  0x35   : > { %277 = vst [vmem:[%s231_s10 + $0x30] sm:$0xf] %v276_v14  ;;  %279 = vst [vmem:[%s231_s10 + $0x34] sm:$0xf] %v278_v15  ;;  %v282_v17 = vld [vmem:[%s1150_s30 + $0x78] sm:$0xf] }
  0x36   : > { %281 = vst [vmem:[%s231_s10 + $0x38] sm:$0xf] %v280_v16  ;;  %283 = vst [vmem:[%s231_s10 + $0x3c] sm:$0xf] %v282_v17 }
  0x37 PF: > { %p760_p0 = scmp.ge.s32.totalorder %s1006_s25, 1  ;;  %p349_p1 = scmp.lt.s32.totalorder %s1006_s25, 5 }
  0x39   : > { %p350_p2 = pnand %p760_p0, %p349_p1 }
  0x3a   : > { %s356_s20 = sand.u32 (!%p350_p2), 1, %s982_s19   ;;  %s363_s27 = sand.u32 (!%p350_p2), 1, %s974_s17  }
  0x3b   : > { %353 = sbr.rel (%p350_p2) target bundleno = 387 (0x183), region = 110  ;;  %s1172_s28 = sshll.u32 (!%p350_p2), %s356_s20, 3 }
  0x3c   : > { %s762_s7 = sshll.u32 (!%p350_p2), %s363_s27, 6  ;;  %s394_s8 = sand.u32 (!%p350_p2), 1, %s966_s15  }
  0x3d   : > { %p398_p3 = scmp.lt.s32.totalorder (!%p350_p2), %s994_s22, 1  ;;  %s763_s9 = sshll.u32 (!%p350_p2), %s394_s8, 3 }
  0x3e   : > { %s358_s17 = scalar_lea.vmem (!%p350_p2), [#allocation3], %s1172_s28  ;;  %s1188_s10 = scalar_lea.vmem (!%p350_p2), [#allocation4], %s762_s7 }
  0x3f   : > { %s1190_s20 = scalar_lea.vmem (!%p350_p2), [#allocation5], %s763_s9  ;;  %p764_p4 = scmp.ne.s32.totalorder (!%p350_p2), %s990_s21, 0 }
  0x42   : > { %s1177_s11 = scalar_select %p398_p3, %s994_s22, 1 }
  0x43   : > { %408 = sbr.rel (%p764_p4) target bundleno = 74 (0x4a), region = 122  ;;  %v1008_v18 = vmov (!%p764_p4), 0.0  }
  0x44   : > { %s400_s29 = scalar_lea.vmem %s1258_s2, %s1177_s11  ;;  %s403_s19 = scalar_lea.vmem %s1259_s3, %s1177_s11  ;;  %409 = vst [vmem:[#allocation2] sm:$0xff] (!%p764_p4), %v1008_v18  ;;  %410 = vst [vmem:[#allocation2 + $0x8] sm:$0xff] (!%p764_p4), %v1008_v18 }
  0x4a PF: > { %v909_v19 = vld [vmem:[%s1188_s10] sm:$0xff]   ;;  %v1009_v20 = vmov 0.0   ;;  %v910_v21 = vld [vmem:[%s1188_s10 + $0x8] sm:$0xff]   ;;  %vm1010_vm0 = vmmov 0   ;;  %v911_v22 = vld [vmem:[%s1188_s10 + $0x10] sm:$0xff]   ;;  %p774_p5 = scmp.ne.s32.totalorder %s990_s21, 1 }
  0x4b   : > { %798 = vmatprep.subr.bf16.mxu0 %v1009_v20  ;;  %814 = vmatprep.mubr.msk.bf16.mxu0 %vm1010_vm0, %v1009_v20  ;;  %v912_v23 = vld [vmem:[%s1188_s10 + $0x18] sm:$0xff]   ;;  %v913_v24 = vld [vmem:[%s1188_s10 + $0x20] sm:$0xff]   ;;  %v914_v25 = vld [vmem:[%s1188_s10 + $0x28] sm:$0xff]   ;;  %v565_v60 = vlaneseq (!%p774_p5) }
  0x4c   : > { %799 = vmatpush3.bf16.msra.mxu0 %v909_v19  ;;  %v915_v26 = vld [vmem:[%s1188_s10 + $0x30] sm:$0xff]   ;;  %v916_v27 = vld [vmem:[%s1188_s10 + $0x38] sm:$0xff]   ;;  %v411_v29 = vld [vmem:[#allocation2] sm:$0xff] }
  0x4d   : > { %800 = vmatprep.subr.bf16.mxu0 %v1009_v20  ;;  %v917_v28 = vld [vmem:[%s358_s17] sm:$0xff]   ;;  %v412_v31 = vld [vmem:[#allocation2 + $0x8] sm:$0xff]  ;;  %v566_v61 = vshrl.u32 (!%p774_p5), %v565_v60, 7  ;;  %v557_v62 = vld [vmem:[%s400_s29] sm:$0x1] (!%p774_p5) }
  0x4e   : > { %v561_v2 = vld [vmem:[%s403_s19] sm:$0x1] (!%p774_p5) }
  0x4f   : > { %v567_v63 = vsub.s32 (!%p774_p5), 0, %v566_v61 }
  0x50   : > { %801 = vmatpush3.bf16.msra.mxu0 %v910_v21 }
  0x51   : > { %802 = vmatprep.subr.bf16.mxu0 %v1009_v20 }
  0x54   : > { %803 = vmatpush3.bf16.msra.mxu0 %v911_v22 }
  0x55   : > { %804 = vmatprep.subr.bf16.mxu0 %v1009_v20 }
  0x58   : > { %805 = vmatpush3.bf16.msra.mxu0 %v912_v23 }
  0x59   : > { %806 = vmatprep.subr.bf16.mxu0 %v1009_v20 }
  0x5c   : > { %807 = vmatpush3.bf16.msra.mxu0 %v913_v24 }
  0x5d   : > { %808 = vmatprep.subr.bf16.mxu0 %v1009_v20 }
  0x60   : > { %809 = vmatpush3.bf16.msra.mxu0 %v914_v25 }
  0x61   : > { %810 = vmatprep.subr.bf16.mxu0 %v1009_v20 }
  0x64   : > { %811 = vmatpush3.bf16.msra.mxu0 %v915_v26 }
  0x65   : > { %812 = vmatprep.subr.bf16.mxu0 %v1009_v20 }
  0x68   : > { %813 = vmatpush3.bf16.msra.mxu0 %v916_v27 }
  0x6b   : > { %815 = vmatmul.mubr.bf16.vlgmr.msra.gmra.mrb[0].mxu0 %v917_v28 }
 0x13d   : > { %533 = sbr.rel (%p774_p5) target bundleno = 379 (0x17b), region = 126 }
 0x13e   : > { %v519_v30 = vpop.f32.mrb[0].mxu0 }
 0x13f   : > { %v526_v32 = vadd.f32 %v519_v30, %v411_v29  ;;  %v816_v33 = vpop.f32.mrb[1].mxu0 }
 0x140   : > { %v522_v34 = vpop.f32.mrb[2].mxu0 }
 0x141   : > { %528 = vst [vmem:[#allocation2] sm:$0xff] %v526_v32  ;;  %v527_v35 = vadd.f32 %v522_v34, %v412_v31  ;;  %v817_v36 = vpop.f32.mrb[3].mxu0 }
 0x143   : > { %529 = vst [vmem:[#allocation2 + $0x8] sm:$0xff] %v527_v35 }
 0x148   : > { %v534_v37 = vld [vmem:[#allocation2] sm:$0xff] }
 0x149   : > { %v545_v40 = vmul.f32 %v534_v37, %v534_v37 }
 0x14a   : > { %v535_v38 = vld [vmem:[#allocation2 + $0x8] sm:$0xff] }
 0x14b   : > { %v536_v39 = vadd.f32 %v535_v38, %v534_v37  ;;  %v546_v41 = vmul.f32 %v535_v38, %v535_v38 }
 0x14d   : > { %v537_v42 = vrot.slane %v536_v39, 4  ;;  %v547_v43 = vadd.f32 %v546_v41, %v545_v40 }
 0x14f   : > { %v538_v44 = vadd.f32 %v537_v42, %v536_v39  ;;  %v548_v45 = vrot.slane %v547_v43, 4 }
 0x151   : > { %v539_v46 = vrot.slane %v538_v44, 2  ;;  %v549_v47 = vadd.f32 %v548_v45, %v547_v43 }
 0x153   : > { %v540_v48 = vadd.f32 %v539_v46, %v538_v44  ;;  %v550_v49 = vrot.slane %v549_v47, 2 }
 0x155   : > { %v541_v50 = vrot.slane %v540_v48, 1  ;;  %v551_v51 = vadd.f32 %v550_v49, %v549_v47 }
 0x157   : > { %v542_v52 = vadd.f32 %v541_v50, %v540_v48  ;;  %v552_v53 = vrot.slane %v551_v51, 1 }
 0x159   : > { %v544_v54 = vmul.f32 0.0625, %v542_v52  ;;  %v553_v55 = vadd.f32 %v552_v53, %v551_v51 }
 0x15b   : > { %v554_v56 = vmul.f32 0.0625, %v553_v55  ;;  %v555_v57 = vmul.f32 %v544_v54, %v544_v54 }
 0x15d   : > { %v556_v58 = vsub.f32 %v554_v56, %v555_v57 }
 0x15f   : > { %v558_v59 = vadd.f32 1e-05, %v556_v58 }
 0x161   : > { %918 = vrsqrt.f32 %v558_v59 }
 0x16b   : > { %v919_v0 = vpop.eup %918 }
 0x16c   : > { %v560_v1 = vmul.f32 %v919_v0, %v557_v62 }
 0x16e   : > { %v562_v3 = vmul.f32 %v560_v1, %v544_v54  ;;  %v568_v4 = vrot.slane %v560_v1, %v567_v63 }
 0x170   : > { %v563_v5 = vsub.f32 %v561_v2, %v562_v3  ;;  %v570_v6 = vmul.f32 %v568_v4, %v534_v37  ;;  %v571_v7 = vmul.f32 %v568_v4, %v535_v38 }
 0x172   : > { %v576_v8 = vrot.slane %v563_v5, %v567_v63 }
 0x174   : > { %v578_v9 = vadd.f32 %v576_v8, %v570_v6  ;;  %v579_v10 = vadd.f32 %v576_v8, %v571_v7 }
 0x176   : > { %v580_v11 = vmax.f32 %v578_v9, 0.0  ;;  %v581_v12 = vmax.f32 %v579_v10, 0.0 }
 0x178   : > { %v787_v13 = vpack.c.bf16 %v581_v12, %v580_v11 }
 0x17a   : > { %788 = vst [vmem:[%s1190_s20] sm:$0xff] %v787_v13  }
 0x17b PF: > { %598 = sbr.rel (!%p1130_p12) target bundleno = 387 (0x183), region = 130  ;;  %s778_s7 = sshll.u32 (%p1130_p12), %s994_s22, 2 }
 0x17c   : > { %s600_s11 = scalar_lea.vmem (%p1130_p12), %s1260_s4, %s778_s7 }
 0x181   : > { %v616_v14 = vld [vmem:[%s1190_s20] sm:$0xf] (%p1130_p12)  ;;  %v618_v15 = vld [vmem:[%s1190_s20 + $0x4] sm:$0xf] (%p1130_p12) }
 0x182   : > { %617 = vst [vmem:[%s600_s11] sm:$0xf] %v616_v14  ;;  %619 = vst [vmem:[%s600_s11 + $0x8] sm:$0xf] %v618_v15 }
 0x183 PF: > { %s14_s25 = sadd.s32 1, %s1006_s25   ;;  %s1271_s19 = sld [smem:[#allocation6_spill]] }
 0x184   : > { %p11_p6 = scmp.ge.s32.totalorder %s14_s25, 6   ;;  %s1272_s20 = sld [smem:[#allocation9_spill]] }
 0x185   : > { %s1273_s14 = sld [smem:[#allocation7_spill]]  ;;  %s1274_s26 = sld [smem:[#allocation8_spill]] }
 0x186   : > { %s1275_s15 = smov %s970_s16  ;;  %s1276_s16 = smov %s1128_s13 }
 0x187   : > { %s1277_s17 = smov %s978_s18  ;;  %s1278_s18 = smov %s1125_s12 }
 0x188   : > { %s1279_s21 = smov %s998_s23  ;;  %s1280_s22 = smov %s1002_s24 }
 0x189   :  { %13 = sbr.rel (!%p11_p6) target bundleno = 6 (0x6), region = 216 }
 0x18b   : > { %s1281_s23 = smov %s1273_s14  ;;  %s1282_s24 = smov %s1274_s26 }

// kernel: predictor_forward.3
= control target key start
LH: loop header
LB: loop body
LE: loop exit
PB: predicated region body
PF: predicated region fallthrough
CT: control target
= control target key end

     0   :  { %8 = vsyncpa [#allocation4], 0  ;;  %s1040_s0 = inlined_call_operand.vmem [shape: bf16[16,256], index: 0, kind: input, shape index: {}]   ;;  %s1041_s1 = inlined_call_operand.vmem [shape: bf16[256,256], index: 1, kind: input, shape index: {}]   ;;  %s1042_s2 = inlined_call_operand.vmem [shape: f32[1,256], index: 2, kind: input, shape index: {}]   ;;  %s1043_s3 = inlined_call_operand.hbm [shape: f32[16,256], index: 3, kind: output, shape index: {}]  }
   0x1   :  { %10 = vsyncpa [#allocation4 + $0x1], 0  ;;  %s831_s12 = smov 0   ;;  %s833_s13 = smov 0  }
   0x2   :  { %s835_s14 = smov 0   ;;  %s837_s15 = smov 0  }
   0x3 LB: > { %s852_s16 = sadd.s32 4294967295, %s805_s15   ;;  %s629_s17 = sadd.s32 4294967294, %s805_s15   ;;  %s805_s15 = sphi %s837_s15, %s1049_s15   ;;  %s801_s14 = sphi %s835_s14, %s1048_s14   ;;  %s797_s13 = sphi %s833_s13, %s1047_s13   ;;  %s793_s12 = sphi %s831_s12, %s1046_s12  }
   0x4   : > { %s856_s18 = sadd.s32 1, %s805_s15   ;;  %s44_s19 = sadd.s32 1, %s801_s14 }
   0x5   : > { %s41_s20 = ssub.s32 %s805_s15, %s856_s18  ;;  %p51_p0 = scmp.ne.s32.totalorder %s801_s14, %s797_s13 }
   0x6   : > { %p42_p1 = scmp.eq.s32.totalorder %s41_s20, 0  ;;  %p52_p2 = scmp.eq.s32.totalorder %s805_s15, 0 }
   0x7   : > { %p107_p3 = scmp.eq.s32.totalorder %s852_s16, 1  ;;  %p112_p4 = scmp.ne.s32.totalorder %s797_s13, %s793_s12 }
   0x8   : > { %s868_s21 = scalar_select %p42_p1, %s801_s14, %s44_s19  }
   0x9   : > { %p53_p5 = por %p52_p2, %p51_p0  ;;  %p870_p6 = por %p107_p3, %p51_p0 }
   0xa   : > { %p113_p7 = scmp.eq.s32.totalorder %s629_s17, 1  ;;  %p631_p9 = scmp.ge.s32.totalorder %s805_s15, 2 }
   0xc   : > { %p874_p8 = por %p113_p7, %p112_p4  ;;  %132 = sbr.rel (%p631_p9) target bundleno = 44 (0x2c), region = 20 }
  0x13   : > { %135 = sbr.rel (!%p53_p5) target bundleno = 44 (0x2c), region = 24  ;;  %s137_s24 = sand.u32 (%p53_p5), 1, %s801_s14  }
  0x14   : > { %s633_s25 = sshll.u32 (%p53_p5), %s805_s15, 2  ;;  %s632_s26 = sshll.u32 (%p53_p5), %s137_s24, 7 }
  0x15   : > { %s886_s29 = scalar_lea.vmem (%p53_p5), %s1041_s1, %s633_s25  ;;  %s890_s30 = scalar_lea.vmem (%p53_p5), [#allocation2], %s632_s26 }
  0x16   : > { %v157_v0 = vld [vmem:[%s886_s29] sm:$0xf] (%p53_p5)  ;;  %v159_v1 = vld [vmem:[%s886_s29 + $0x8] sm:$0xf] (%p53_p5)  ;;  %v161_v2 = vld [vmem:[%s886_s29 + $0x10] sm:$0xf] (%p53_p5) }
  0x17   : > { %158 = vst [vmem:[%s890_s30] sm:$0xf] (%p53_p5), %v157_v0  ;;  %160 = vst [vmem:[%s890_s30 + $0x4] sm:$0xf] (%p53_p5), %v159_v1  ;;  %v163_v3 = vld [vmem:[%s886_s29 + $0x18] sm:$0xf] (%p53_p5) }
  0x18   : > { %v165_v4 = vld [vmem:[%s886_s29 + $0x20] sm:$0xf] (%p53_p5)  ;;  %162 = vst [vmem:[%s890_s30 + $0x8] sm:$0xf] (%p53_p5), %v161_v2  ;;  %164 = vst [vmem:[%s890_s30 + $0xc] sm:$0xf] (%p53_p5), %v163_v3 }
  0x19   : > { %166 = vst [vmem:[%s890_s30 + $0x10] sm:$0xf] (%p53_p5), %v165_v4  ;;  %v167_v5 = vld [vmem:[%s886_s29 + $0x28] sm:$0xf] (%p53_p5)  ;;  %v169_v6 = vld [vmem:[%s886_s29 + $0x30] sm:$0xf] (%p53_p5) }
  0x1a   : > { %v171_v7 = vld [vmem:[%s886_s29 + $0x38] sm:$0xf]  ;;  %168 = vst [vmem:[%s890_s30 + $0x14] sm:$0xf] %v167_v5  ;;  %170 = vst [vmem:[%s890_s30 + $0x18] sm:$0xf] %v169_v6 }
  0x1b   : > { %172 = vst [vmem:[%s890_s30 + $0x1c] sm:$0xf] %v171_v7  ;;  %v173_v8 = vld [vmem:[%s886_s29 + $0x40] sm:$0xf]  ;;  %v175_v9 = vld [vmem:[%s886_s29 + $0x48] sm:$0xf] }
  0x1c   : > { %v177_v10 = vld [vmem:[%s886_s29 + $0x50] sm:$0xf]  ;;  %174 = vst [vmem:[%s890_s30 + $0x20] sm:$0xf] %v173_v8  ;;  %176 = vst [vmem:[%s890_s30 + $0x24] sm:$0xf] %v175_v9 }
  0x1d   : > { %178 = vst [vmem:[%s890_s30 + $0x28] sm:$0xf] %v177_v10  ;;  %v179_v11 = vld [vmem:[%s886_s29 + $0x58] sm:$0xf]  ;;  %v181_v12 = vld [vmem:[%s886_s29 + $0x60] sm:$0xf] }
  0x1e   : > { %v183_v13 = vld [vmem:[%s886_s29 + $0x68] sm:$0xf]  ;;  %180 = vst [vmem:[%s890_s30 + $0x2c] sm:$0xf] %v179_v11  ;;  %182 = vst [vmem:[%s890_s30 + $0x30] sm:$0xf] %v181_v12 }
  0x1f   : > { %184 = vst [vmem:[%s890_s30 + $0x34] sm:$0xf] %v183_v13  ;;  %v185_v14 = vld [vmem:[%s886_s29 + $0x70] sm:$0xf]  ;;  %v187_v15 = vld [vmem:[%s886_s29 + $0x78] sm:$0xf] }
  0x20   : > { %v189_v16 = vld [vmem:[%s886_s29 + $0x80] sm:$0xf]  ;;  %186 = vst [vmem:[%s890_s30 + $0x38] sm:$0xf] %v185_v14  ;;  %188 = vst [vmem:[%s890_s30 + $0x3c] sm:$0xf] %v187_v15 }
  0x21   : > { %190 = vst [vmem:[%s890_s30 + $0x40] sm:$0xf] %v189_v16  ;;  %v191_v17 = vld [vmem:[%s886_s29 + $0x88] sm:$0xf]  ;;  %v193_v18 = vld [vmem:[%s886_s29 + $0x90] sm:$0xf] }
  0x22   : > { %v195_v19 = vld [vmem:[%s886_s29 + $0x98] sm:$0xf]  ;;  %192 = vst [vmem:[%s890_s30 + $0x44] sm:$0xf] %v191_v17  ;;  %194 = vst [vmem:[%s890_s30 + $0x48] sm:$0xf] %v193_v18 }
  0x23   : > { %196 = vst [vmem:[%s890_s30 + $0x4c] sm:$0xf] %v195_v19  ;;  %v197_v20 = vld [vmem:[%s886_s29 + $0xa0] sm:$0xf]  ;;  %v199_v21 = vld [vmem:[%s886_s29 + $0xa8] sm:$0xf] }
  0x24   : > { %v201_v22 = vld [vmem:[%s886_s29 + $0xb0] sm:$0xf]  ;;  %198 = vst [vmem:[%s890_s30 + $0x50] sm:$0xf] %v197_v20  ;;  %200 = vst [vmem:[%s890_s30 + $0x54] sm:$0xf] %v199_v21 }
  0x25   : > { %202 = vst [vmem:[%s890_s30 + $0x58] sm:$0xf] %v201_v22  ;;  %v203_v23 = vld [vmem:[%s886_s29 + $0xb8] sm:$0xf]  ;;  %v205_v24 = vld [vmem:[%s886_s29 + $0xc0] sm:$0xf] }
  0x26   : > { %v207_v25 = vld [vmem:[%s886_s29 + $0xc8] sm:$0xf]  ;;  %204 = vst [vmem:[%s890_s30 + $0x5c] sm:$0xf] %v203_v23  ;;  %206 = vst [vmem:[%s890_s30 + $0x60] sm:$0xf] %v205_v24 }
  0x27   : > { %208 = vst [vmem:[%s890_s30 + $0x64] sm:$0xf] %v207_v25  ;;  %v209_v26 = vld [vmem:[%s886_s29 + $0xd0] sm:$0xf]  ;;  %v211_v27 = vld [vmem:[%s886_s29 + $0xd8] sm:$0xf] }
  0x28   : > { %v213_v28 = vld [vmem:[%s886_s29 + $0xe0] sm:$0xf]  ;;  %210 = vst [vmem:[%s890_s30 + $0x68] sm:$0xf] %v209_v26  ;;  %212 = vst [vmem:[%s890_s30 + $0x6c] sm:$0xf] %v211_v27 }
  0x29   : > { %214 = vst [vmem:[%s890_s30 + $0x70] sm:$0xf] %v213_v28  ;;  %v215_v29 = vld [vmem:[%s886_s29 + $0xe8] sm:$0xf]  ;;  %v217_v30 = vld [vmem:[%s886_s29 + $0xf0] sm:$0xf] }
  0x2a   : > { %v219_v31 = vld [vmem:[%s886_s29 + $0xf8] sm:$0xf]  ;;  %216 = vst [vmem:[%s890_s30 + $0x74] sm:$0xf] %v215_v29  ;;  %218 = vst [vmem:[%s890_s30 + $0x78] sm:$0xf] %v217_v30 }
  0x2b   : > { %220 = vst [vmem:[%s890_s30 + $0x7c] sm:$0xf] %v219_v31 }
  0x2c PF: > { %p634_p10 = scmp.ge.s32.totalorder %s805_s15, 1  ;;  %p312_p11 = scmp.lt.s32.totalorder %s805_s15, 3 }
  0x2e   : > { %p313_p12 = pnand %p634_p10, %p312_p11 }
  0x2f   : > { %s957_s4 = sand.u32 (!%p313_p12), 1, %s797_s13   ;;  %v742_v32 = vld [vmem:[%s1040_s0 + $0x4] ss:$8 sps:$4 sm:$0xff] (!%p313_p12)   ;;  %v740_v49 = vld [vmem:[%s1040_s0] ss:$8 sps:$4 sm:$0xff] (!%p313_p12)   ;;  %p345_p13 = scmp.lt.s32.totalorder (!%p313_p12), %s852_s16, 1 }
  0x30   : > { %316 = sbr.rel (%p313_p12) target bundleno = 318 (0x13e), region = 69  ;;  %s635_s5 = sshll.u32 (!%p313_p12), %s957_s4, 7  ;;  %528 = vmatprep.mubr.bf16.mxu0 (!%p313_p12), %v742_v32 }
  0x31   : > { %s963_s8 = scalar_lea.vmem (!%p313_p12), [#allocation2], %s635_s5  ;;  %s636_s17 = sshll.u32 (!%p313_p12), %s957_s4, 4 }
  0x32   : > { %v724_v33 = vld [vmem:[%s963_s8 + $0x40] sm:$0xff] (!%p313_p12)   ;;  %v726_v35 = vld [vmem:[%s963_s8 + $0x48] sm:$0xff] (!%p313_p12)   ;;  %v728_v37 = vld [vmem:[%s963_s8 + $0x50] sm:$0xff] (!%p313_p12)   ;;  %s344_s25 = scalar_lea.vmem (!%p313_p12), [#allocation3], %s636_s17  ;;  %s657_s27 = sshll.u32 (!%p313_p12), %s852_s16, 7 }
  0x33   : > { %v725_v34 = vld [vmem:[%s963_s8] sm:$0xff] (!%p313_p12)   ;;  %660 = vmatprep.subr.bf16.mxu0 (!%p313_p12), %v724_v33  ;;  %v727_v36 = vld [vmem:[%s963_s8 + $0x8] sm:$0xff] (!%p313_p12)   ;;  %v729_v38 = vld [vmem:[%s963_s8 + $0x10] sm:$0xff] (!%p313_p12)   ;;  %s552_s26 = sshll.u32 (!%p313_p12), %s344_s25, 4  ;;  %s996_s30 = scalar_lea.hbm (!%p313_p12), %s1043_s3, %s657_s27  ;;  %s991_s26 = int_to_ptr.vmem [resolvable:$true] %s552_s26 }
  0x34   : > { %661 = vmatpush3.bf16.msra.mxu0 (!%p313_p12), %v725_v34  ;;  %v730_v39 = vld [vmem:[%s963_s8 + $0x58] sm:$0xff] (!%p313_p12)   ;;  %v732_v41 = vld [vmem:[%s963_s8 + $0x60] sm:$0xff] (!%p313_p12)   ;;  %v734_v43 = vld [vmem:[%s963_s8 + $0x68] sm:$0xff] (!%p313_p12)   ;;  %s540_s5 = scalar_lea.sflag (!%p313_p12), [#allocation4], %s957_s4  ;;  %s743_s6 = scalar_lea.vmem (!%p313_p12), %s991_s26, 256 }
  0x35   : > { %662 = vmatprep.subr.bf16.mxu0 (!%p313_p12), %v726_v35  ;;  %v731_v40 = vld [vmem:[%s963_s8 + $0x18] sm:$0xff] (!%p313_p12)   ;;  %v733_v42 = vld [vmem:[%s963_s8 + $0x20] sm:$0xff] (!%p313_p12)   ;;  %v735_v44 = vld [vmem:[%s963_s8 + $0x28] sm:$0xff] (!%p313_p12)   ;;  %p744_p0 = scmp.ne.s32.totalorder (!%p313_p12), %s991_s26, %s743_s6 }
  0x36   : > { %v736_v45 = vld [vmem:[%s963_s8 + $0x70] sm:$0xff] (!%p313_p12)   ;;  %v738_v47 = vld [vmem:[%s963_s8 + $0x78] sm:$0xff] (!%p313_p12)  }
  0x37   : > { %v737_v46 = vld [vmem:[%s963_s8 + $0x30] sm:$0xff]   ;;  %v739_v48 = vld [vmem:[%s963_s8 + $0x38] sm:$0xff]   ;;  %s346_s11 = scalar_select %p345_p13, %s852_s16, 1 }
  0x38   : > { %663 = vmatpush3.bf16.msra.mxu0 %v727_v36  ;;  %p745_p1 = pnand %p744_p0, %p870_p6  ;;  %s807_s16 = smov [#allocation3]  }
  0x39   : > { %664 = vmatprep.subr.bf16.mxu0 %v728_v37  ;;  %s347_s24 = scalar_lea.vmem %s1042_s2, %s346_s11  ;;  %s747_s7 = sshll.u32 %s807_s16, 4  ;;  %s748_s7 = int_to_ptr.vmem [resolvable:$false] %s747_s7 }
  0x3a   : > { %v637_v51 = vld [vmem:[%s347_s24] ss:$0 sm:$0xff]  ;;  %p746_p2 = pneg %p745_p1  ;;  %s749_s8 = scalar_lea.vmem %s748_s7, 512 }
  0x3b   : > { %p750_p3 = scmp.lt.s32.totalorder %s991_s26, %s748_s7  ;;  %p751_p4 = scmp.lt.s32.totalorder %s749_s8, %s743_s6 }
  0x3c   : > { %665 = vmatpush3.bf16.msra.mxu0 %v729_v38 }
  0x3d   : > { %666 = vmatprep.subr.bf16.mxu0 %v730_v39  ;;  %p752_p5 = por %p751_p4, %p750_p3 }
  0x3f   : > { %p753_p7 = pnand %p752_p5, %p746_p2 }
  0x40   : > { %667 = vmatpush3.bf16.msra.mxu0 %v731_v40 }
  0x41   : > { %668 = vmatprep.subr.bf16.mxu0 %v732_v41 }
  0x44   : > { %669 = vmatpush3.bf16.msra.mxu0 %v733_v42 }
  0x45   : > { %670 = vmatprep.subr.bf16.mxu0 %v734_v43 }
  0x48   : > { %671 = vmatpush3.bf16.msra.mxu0 %v735_v44 }
  0x49   : > { %672 = vmatprep.subr.bf16.mxu0 %v736_v45 }
  0x4c   : > { %673 = vmatpush3.bf16.msra.mxu0 %v737_v46 }
  0x4d   : > { %674 = vmatprep.subr.bf16.mxu0 %v738_v47 }
  0x50   : > { %675 = vmatpush3.bf16.msra.mxu0 %v739_v48 }
  0x53   : > { %529 = vmatmul.mubr.bf16.vlgmr.msra.gmra.mrb[0].mxu0 %v740_v49 }
 0x126   : > { %v676_v50 = vpop.f32.mrb[0].mxu0 }
 0x127   : > { %v677_v52 = vpop.f32.mrb[1].mxu0 }
 0x128   : > { %v678_v53 = vadd.f32 %v677_v52, %v676_v50  ;;  %v679_v54 = vpop.f32.mrb[2].mxu0 }
 0x129   : > { %v680_v55 = vpop.f32.mrb[3].mxu0 }
 0x12a   : > { %v531_v56 = vadd.f32 %v678_v53, %v637_v51  ;;  %v681_v57 = vadd.f32 %v680_v55, %v679_v54 }
 0x12c   : > { %537 = vst [vmem:[%s344_s25] sm:$0xff] %v531_v56  ;;  %v534_v58 = vadd.f32 %v681_v57, %v637_v51 }
 0x12e   : > { %538 = vst [vmem:[%s344_s25 + $0x8] sm:$0xff] %v534_v58 }
 0x12f   : > { %756 = shalt.err (!%p753_p7)
}
 0x130   : > { %s757_s9 = scalar_lea.hbm %s996_s30, 256  ;;  %s761_s17 = scalar_lea.hbm %s1043_s3, 512 }
 0x131   : > { %p758_p10 = scmp.ne.s32.totalorder %s996_s30, %s757_s9  ;;  %p762_p13 = scmp.lt.u32.totalorder %s996_s30, %s1043_s3 }
 0x132   : > { %p763_p0 = scmp.lt.u32.totalorder %s761_s17, %s757_s9  ;;  %p765_p2 = scmp.lt.u32.totalorder %s757_s9, %s996_s30 }
 0x133   : > { %p759_p11 = pnand %p758_p10, %p870_p6 }
 0x134   : > { %p764_p1 = por %p763_p0, %p762_p13 }
 0x135   : > { %p760_p12 = pneg %p759_p11 }
 0x136   : > { %p766_p3 = por %p765_p2, %p764_p1 }
 0x138   : > { %p767_p4 = pnand %p766_p3, %p760_p12 }
 0x13a   : > { %770 = shalt.err (!%p767_p4)
}
 0x13b   : > { %s808_s24 = smov 128   ;;  %s809_s25 = smov 256  }
 0x13c   : > { %s810_s27 = smov 8  }
 0x13d   : > { %682 = dma.vmem_to_hbm [thread:$0]  (%p870_p6), %s991_s26, 256, %s996_s30, %s540_s5, %s808_s24, %s809_s25, %s810_s27  }
 0x13e PF: > { %s567_s28 = sand.u32 1, %s793_s12   ;;  %p685_p5 = pnand %p631_p9, %p874_p8 }
 0x13f   : > { %s568_s29 = scalar_lea.sflag [#allocation4], %s567_s28 }
 0x140   : > { %788 = dma.done.wait (!%p685_p5), %s568_s29, 256  }
 0x141   : > { %790 = vsyncadd (!%p685_p5), %s568_s29, 4294967040  ;;  %p13_p7 = scmp.ge.s32.totalorder %s856_s18, 4   ;;  %s1046_s12 = smov %s797_s13 }
 0x142   : > { %s1047_s13 = smov %s801_s14  ;;  %s1048_s14 = smov %s868_s21 }
 0x143   : > { %s1049_s15 = smov %s856_s18  ;;  %15 = sbr.rel (!%p13_p7) target bundleno = 3 (0x3), region = 116 }
 0x14a   :  { %573 = vsyncpa [#allocation4], 1 }
 0x14b   :  { %575 = vsyncpa [#allocation4 + $0x1], 1 }

</bundles_post_ra>
